<compile_context>
chip_gen: v7x
topology: tpu7x:2x2x1
jax: 0.10.0
libtpu: 0.0.40
codegen_flags: <defaults>
</compile_context>

<pallas_src>
import functools

import jax
import jax.numpy as jnp
from jax.experimental import pallas as pl
from jax.experimental.pallas import tpu as pltpu


def _round_up(x, m):
    return (x + m - 1) // m * m


def decoder_head_kernel(x_ref, w_ref, b_ref, tgt_ref,
                        logits_ref, rowloss_ref,
                        m_sc, l_sc, t_sc, *, tn):
    j = pl.program_id(1)
    nj = pl.num_programs(1)

    # init running-logsumexp / target-logit accumulators on the first vocab tile
    @pl.when(j == 0)
    def _():
        m_sc[...] = jnp.full_like(m_sc, -jnp.inf)
        l_sc[...] = jnp.zeros_like(l_sc)
        t_sc[...] = jnp.zeros_like(t_sc)

    # --- linear head tile: logits = x @ W[:, j*tn:(j+1)*tn] + b  (bf16 MXU, f32 acc) ---
    logits = jnp.dot(x_ref[...], w_ref[...], preferred_element_type=jnp.float32)
    logits = logits + b_ref[...]                                  # (tm, tn) f32
    logits_ref[...] = logits.astype(logits_ref.dtype)             # bf16 writeback

    tm = logits.shape[0]

    # --- online logsumexp update (single pass over this logits tile) ---
    m_tile = jnp.max(logits, axis=-1, keepdims=True)              # (tm, 1)
    m_new = jnp.maximum(m_sc[...], m_tile)
    alpha = jnp.exp(m_sc[...] - m_new)
    l_sc[...] = alpha * l_sc[...] + jnp.sum(jnp.exp(logits - m_new),
                                            axis=-1, keepdims=True)
    m_sc[...] = m_new

    # --- fused target-logit pick: shift the (tm,1) target, not the (tm,tn) iota ---
    local_tgt = tgt_ref[...] - j * tn                             # (tm, 1); -1 pad never hits
    col_ids = jax.lax.broadcasted_iota(jnp.int32, (tm, tn), 1)
    t_sc[...] = t_sc[...] + jnp.sum(
        jnp.where(col_ids == local_tgt, logits, 0.0), axis=-1, keepdims=True)

    # --- finalize: per-row cross-entropy, written exactly once per row tile ---
    @pl.when(j == nj - 1)
    def _():
        rowloss_ref[...] = m_sc[...] + jnp.log(l_sc[...]) - t_sc[...]


def _vmem_capacity_bytes():
    try:
        return int(pltpu.get_tpu_info().vmem_capacity_bytes)
    except Exception:
        return 64 * 1024 * 1024          # conservative fallback (v7x per-TC VMEM)


def _tile_vmem_bytes(tm, tn, H):
    # double-buffered pipeline buffers + f32 scratch accumulators
    return (2 * (tm * H * 2)             # x tile (bf16)
            + 2 * (H * tn * 2)           # W tile (bf16)
            + 2 * (tn * 4)               # bias tile
            + 2 * (tm * 4)               # targets tile
            + 2 * (tm * tn * 2)          # logits tile (bf16)
            + 2 * (tm * 4)               # row-loss tile
            + 3 * (tm * 4))              # running max / sum-exp / target-logit scratch


def prepare_decoder_head(w, b, *, tn=512):
    """One-time (init) preprocessing: bf16 cast + vocab padding, hoisted off the hot path.

    Returns (wp[H, Vp] bf16, bp[1, Vp] f32, V, tn).  Padded vocab columns get a huge
    negative bias so exp() kills them in the logsumexp.
    """
    H, V = w.shape
    tn = min(tn, _round_up(V, 128))
    assert tn % 128 == 0
    Vp = _round_up(V, tn)
    wp = w.astype(jnp.bfloat16)
    bp = b.astype(jnp.float32)
    if Vp != V:
        wp = jnp.pad(wp, ((0, 0), (0, Vp - V)))
        bp = jnp.pad(bp, (0, Vp - V), constant_values=-1e30)
    return wp, bp.reshape(1, Vp), V, tn


def base_decoder_forward(latent, wp, bp, targets, *, vocab_size=None, tm=512, tn=512):
    """latent: [B, S, H] f32; wp: [H, Vp] bf16 (prepared); bp: [1, Vp] f32; targets: [B, S] int32.

    Returns {'logits': [B, S, V] bf16, 'loss': scalar f32 (mean cross-entropy)}.
    """
    B, S, H = latent.shape
    assert wp.shape[0] == H
    Vp = wp.shape[1]
    V = Vp if vocab_size is None else int(vocab_size)
    N = B * S

    # vocab tile must divide the prepared (padded) vocab and stay lane-aligned
    tn = min(tn, Vp)
    assert tn % 128 == 0 and Vp % tn == 0

    # row tile: no bigger than the (padded) row count; keep sublane-friendly
    tm = max(16, min(tm, _round_up(N, 16)))
    assert tm % 8 == 0

    # fit tiles to the per-core VMEM budget (128 MiB on v5e/v6e, 64 MiB on v7x)
    budget = int(0.75 * _vmem_capacity_bytes())
    while tm > 64 and _tile_vmem_bytes(tm, tn, H) > budget:
        tm //= 2
    while (tn > 128 and tn % 256 == 0 and Vp % (tn // 2) == 0
           and _tile_vmem_bytes(tm, tn, H) > budget):
        tn //= 2

    Np = _round_up(N, tm)
    x = latent.reshape(N, H).astype(jnp.bfloat16)
    tgt = targets.reshape(N, 1).astype(jnp.int32)
    if Np != N:
        x = jnp.pad(x, ((0, Np - N), (0, 0)))
        tgt = jnp.pad(tgt, ((0, Np - N), (0, 0)), constant_values=-1)

    n_i = Np // tm
    n_j = Vp // tn

    kernel = functools.partial(decoder_head_kernel, tn=tn)

    logits, row_losses = pl.pallas_call(
        kernel,
        out_shape=(jax.ShapeDtypeStruct((Np, Vp), jnp.bfloat16),
                   jax.ShapeDtypeStruct((Np, 1), jnp.float32)),
        grid_spec=pltpu.PrefetchScalarGridSpec(
            num_scalar_prefetch=0,
            grid=(n_i, n_j),                                     # rows, then vocab (reduction last)
            in_specs=[
                pl.BlockSpec((tm, H), lambda i, j: (i, 0)),      # x row tile (resident across j)
                pl.BlockSpec((H, tn), lambda i, j: (0, j)),      # weight vocab tile (streamed)
                pl.BlockSpec((1, tn), lambda i, j: (0, j)),      # bias vocab tile
                pl.BlockSpec((tm, 1), lambda i, j: (i, 0)),      # targets row tile
            ],
            out_specs=[
                pl.BlockSpec((tm, tn), lambda i, j: (i, j)),     # lane-dense bf16 logits tile
                pl.BlockSpec((tm, 1), lambda i, j: (i, 0)),      # per-row loss (written at last j)
            ],
            scratch_shapes=[
                pltpu.VMEM((tm, 1), jnp.float32),   # running max
                pltpu.VMEM((tm, 1), jnp.float32),   # running sum of exp
                pltpu.VMEM((tm, 1), jnp.float32),   # running target logit
            ],
        ),
        compiler_params=pltpu.CompilerParams(
            dimension_semantics=("parallel", "arbitrary"),       # rows shard across TCs
            vmem_limit_bytes=budget,
        ),
    )(x, wp, bp, tgt)

    rl = row_losses[:N, 0] if Np != N else row_losses[:, 0]
    loss = jnp.sum(rl) / jnp.float32(N)                          # mean over real rows only

    # skip the padded-logits copy when tiles divide exactly (the common LLM-vocab case)
    if Np == N and Vp == V:
        logits_out = logits.reshape(B, S, V)
    else:
        logits_out = logits[:N, :V].reshape(B, S, V)

    return {"logits": logits_out, "loss": loss}


if __name__ == "__main__":
    B, S, H, V = 2, 8, 32, 256
    key = jax.random.PRNGKey(0)
    k1, k2, k3, k4 = jax.random.split(key, 4)

    latent = jax.random.normal(k1, (B, S, H), dtype=jnp.float32)
    w = jax.random.normal(k2, (H, V), dtype=jnp.float32) * 0.05
    b = jax.random.normal(k3, (V,), dtype=jnp.float32) * 0.01
    targets = jax.random.randint(k4, (B, S), 0, V, dtype=jnp.int32)

    # one-time (init-style) weight preprocessing, hoisted off the forward path;
    # tn=128 at these tiny demo shapes so the vocab-reduction loop is exercised.
    wp, bp, vocab, tn = prepare_decoder_head(w, b, tn=128)

    out = base_decoder_forward(latent, wp, bp, targets, vocab_size=vocab, tn=tn)
    jax.block_until_ready(out)

    # pure-JAX reference (same bf16 MXU inputs, f32 accumulation)
    xr = latent.reshape(-1, H).astype(jnp.bfloat16)
    logits_ref = jnp.dot(xr, w.astype(jnp.bfloat16),
                         preferred_element_type=jnp.float32) + b
    lse_ref = jax.nn.logsumexp(logits_ref, axis=-1)
    tgt_flat = targets.reshape(-1)
    loss_ref = jnp.mean(lse_ref - logits_ref[jnp.arange(B * S), tgt_flat])

    assert out["logits"].shape == (B, S, V)
    assert jnp.allclose(out["logits"].astype(jnp.float32).reshape(-1, V),
                        logits_ref, atol=2e-2, rtol=2e-2)
    assert jnp.allclose(out["loss"], loss_ref, atol=1e-2, rtol=1e-2)

    print("KERNEL_OK")
</pallas_src>

<mosaic_0001>
module attributes {stable_mosaic.version = 11 : i64} {
  func.func @decoder_head_kernel(%arg0: i32, %arg1: i32, %arg2: memref<16x32xbf16, #tpu.memory_space<vmem>>, %arg3: memref<32x128xbf16, #tpu.memory_space<vmem>>, %arg4: memref<1x128xf32, #tpu.memory_space<vmem>>, %arg5: memref<16x1xi32, #tpu.memory_space<vmem>>, %arg6: memref<16x128xbf16, #tpu.memory_space<vmem>>, %arg7: memref<16x1xf32, #tpu.memory_space<vmem>>, %arg8: memref<16x1xf32, #tpu.memory_space<vmem>>, %arg9: memref<16x1xf32, #tpu.memory_space<vmem>>, %arg10: memref<16x1xf32, #tpu.memory_space<vmem>>) attributes {dimension_semantics = [#tpu.dimension_semantics<parallel>, #tpu.dimension_semantics<arbitrary>], iteration_bounds = array<i64: 1, 2>, scalar_prefetch = 0 : i64, scratch_operands = 3 : i64, tpu.core_type = #tpu.core_type<tc>, window_params = [{transform_indices = @transform_0, window_bounds = array<i64: 16, 32>}, {transform_indices = @transform_1, window_bounds = array<i64: 32, 128>}, {transform_indices = @transform_2, window_bounds = array<i64: 1, 128>}, {transform_indices = @transform_3, window_bounds = array<i64: 16, 1>}, {transform_indices = @transform_4, window_bounds = array<i64: 16, 128>}, {transform_indices = @transform_5, window_bounds = array<i64: 16, 1>}]} {
    %c0_i32 = arith.constant 0 : i32
    %0 = arith.cmpi eq, %arg1, %c0_i32 : i32
    %1 = arith.extui %0 : i1 to i32
    %c0_i32_0 = arith.constant 0 : i32
    %2 = arith.cmpi ne, %1, %c0_i32_0 : i32
    scf.if %2 {
      %cst_29 = arith.constant 0xFF800000 : f32
      %45 = vector.broadcast %cst_29 : f32 to vector<16x1xf32>
      %c0_30 = arith.constant 0 : index
      %c0_31 = arith.constant 0 : index
      %46 = vector.load %arg8[%c0_30, %c0_31] : memref<16x1xf32, #tpu.memory_space<vmem>>, vector<16x1xf32>
      tpu.vector_store %arg8[%c0_30, %c0_31], %45 {strides = array<i32>} : memref<16x1xf32, #tpu.memory_space<vmem>>, vector<16x1xf32>,
      %cst_32 = arith.constant 0.000000e+00 : f32
      %47 = vector.broadcast %cst_32 : f32 to vector<16x1xf32>
      %c0_33 = arith.constant 0 : index
      %c0_34 = arith.constant 0 : index
      %48 = vector.load %arg9[%c0_33, %c0_34] : memref<16x1xf32, #tpu.memory_space<vmem>>, vector<16x1xf32>
      tpu.vector_store %arg9[%c0_33, %c0_34], %47 {strides = array<i32>} : memref<16x1xf32, #tpu.memory_space<vmem>>, vector<16x1xf32>,
      %cst_35 = arith.constant 0.000000e+00 : f32
      %49 = vector.broadcast %cst_35 : f32 to vector<16x1xf32>
      %c0_36 = arith.constant 0 : index
      %c0_37 = arith.constant 0 : index
      %50 = vector.load %arg10[%c0_36, %c0_37] : memref<16x1xf32, #tpu.memory_space<vmem>>, vector<16x1xf32>
      tpu.vector_store %arg10[%c0_36, %c0_37], %49 {strides = array<i32>} : memref<16x1xf32, #tpu.memory_space<vmem>>, vector<16x1xf32>,
    } else {
    }
    %c0 = arith.constant 0 : index
    %c0_1 = arith.constant 0 : index
    %3 = vector.load %arg2[%c0, %c0_1] : memref<16x32xbf16, #tpu.memory_space<vmem>>, vector<16x32xbf16>
    %c0_2 = arith.constant 0 : index
    %c0_3 = arith.constant 0 : index
    %4 = vector.load %arg3[%c0_2, %c0_3] : memref<32x128xbf16, #tpu.memory_space<vmem>>, vector<32x128xbf16>
    %cst = arith.constant dense<0.000000e+00> : vector<16x128xf32>
    %5 = tpu.matmul %3, %4, %cst {dimension_numbers = #tpu.dot_dimension_numbers<[1], [0], [0], [1], [0, 0, 1, 1], [], []>} : vector<16x32xbf16>, vector<32x128xbf16>, vector<16x128xf32> -> vector<16x128xf32>
    %c0_4 = arith.constant 0 : index
    %c0_5 = arith.constant 0 : index
    %6 = vector.load %arg4[%c0_4, %c0_5] : memref<1x128xf32, #tpu.memory_space<vmem>>, vector<1x128xf32>
    %7 = vector.broadcast %6 : vector<1x128xf32> to vector<16x128xf32>
    %8 = arith.addf %5, %7 : vector<16x128xf32>
    %9 = arith.truncf %8 : vector<16x128xf32> to vector<16x128xbf16>
    %c0_6 = arith.constant 0 : index
    %c0_7 = arith.constant 0 : index
    %10 = vector.load %arg6[%c0_6, %c0_7] : memref<16x128xbf16, #tpu.memory_space<vmem>>, vector<16x128xbf16>
    tpu.vector_store %arg6[%c0_6, %c0_7], %9 {strides = array<i32>} : memref<16x128xbf16, #tpu.memory_space<vmem>>, vector<16x128xbf16>,
    %cst_8 = arith.constant dense<0xFF800000> : vector<16xf32>
    %11 = vector.multi_reduction <maximumf>, %8, %cst_8 [1] : vector<16x128xf32> to vector<16xf32>
    %12 = vector.shape_cast %11 : vector<16xf32> to vector<16x1xf32>
    %c0_9 = arith.constant 0 : index
    %c0_10 = arith.constant 0 : index
    %13 = vector.load %arg8[%c0_9, %c0_10] : memref<16x1xf32, #tpu.memory_space<vmem>>, vector<16x1xf32>
    %14 = arith.maximumf %13, %12 : vector<16x1xf32>
    %c0_11 = arith.constant 0 : index
    %c0_12 = arith.constant 0 : index
    %15 = vector.load %arg8[%c0_11, %c0_12] : memref<16x1xf32, #tpu.memory_space<vmem>>, vector<16x1xf32>
    %16 = arith.subf %15, %14 : vector<16x1xf32>
    %17 = math.exp %16 : vector<16x1xf32>
    %c0_13 = arith.constant 0 : index
    %c0_14 = arith.constant 0 : index
    %18 = vector.load %arg9[%c0_13, %c0_14] : memref<16x1xf32, #tpu.memory_space<vmem>>, vector<16x1xf32>
    %19 = arith.mulf %17, %18 : vector<16x1xf32>
    %20 = vector.broadcast %14 : vector<16x1xf32> to vector<16x128xf32>
    %21 = arith.subf %8, %20 : vector<16x128xf32>
    %22 = math.exp %21 : vector<16x128xf32>
    %cst_15 = arith.constant dense<0.000000e+00> : vector<16xf32>
    %23 = vector.multi_reduction <add>, %22, %cst_15 [1] : vector<16x128xf32> to vector<16xf32>
    %24 = vector.shape_cast %23 : vector<16xf32> to vector<16x1xf32>
    %25 = arith.addf %19, %24 : vector<16x1xf32>
    %c0_16 = arith.constant 0 : index
    %c0_17 = arith.constant 0 : index
    %26 = vector.load %arg9[%c0_16, %c0_17] : memref<16x1xf32, #tpu.memory_space<vmem>>, vector<16x1xf32>
    tpu.vector_store %arg9[%c0_16, %c0_17], %25 {strides = array<i32>} : memref<16x1xf32, #tpu.memory_space<vmem>>, vector<16x1xf32>,
    %c0_18 = arith.constant 0 : index
    %c0_19 = arith.constant 0 : index
    %27 = vector.load %arg8[%c0_18, %c0_19] : memref<16x1xf32, #tpu.memory_space<vmem>>, vector<16x1xf32>
    tpu.vector_store %arg8[%c0_18, %c0_19], %14 {strides = array<i32>} : memref<16x1xf32, #tpu.memory_space<vmem>>, vector<16x1xf32>,
    %c0_20 = arith.constant 0 : index
    %c0_21 = arith.constant 0 : index
    %28 = vector.load %arg5[%c0_20, %c0_21] : memref<16x1xi32, #tpu.memory_space<vmem>>, vector<16x1xi32>
    %c128_i32 = arith.constant 128 : i32
    %29 = arith.muli %arg1, %c128_i32 : i32
    %30 = vector.broadcast %29 : i32 to vector<16x1xi32>
    %31 = arith.subi %28, %30 : vector<16x1xi32>
    %32 = tpu.iota {dimensions = array<i32: 1>} : vector<16x128xi32>
    %c0_22 = arith.constant 0 : index
    %c0_23 = arith.constant 0 : index
    %33 = vector.load %arg10[%c0_22, %c0_23] : memref<16x1xf32, #tpu.memory_space<vmem>>, vector<16x1xf32>
    %34 = vector.broadcast %31 : vector<16x1xi32> to vector<16x128xi32>
    %35 = arith.cmpi eq, %32, %34 : vector<16x128xi32>
    %cst_24 = arith.constant 0.000000e+00 : f32
    %36 = vector.broadcast %cst_24 : f32 to vector<16x128xf32>
    %37 = arith.select %35, %8, %36 : vector<16x128xi1>, vector<16x128xf32>
    %cst_25 = arith.constant dense<0.000000e+00> : vector<16xf32>
    %38 = vector.multi_reduction <add>, %37, %cst_25 [1] : vector<16x128xf32> to vector<16xf32>
    %39 = vector.shape_cast %38 : vector<16xf32> to vector<16x1xf32>
    %40 = arith.addf %33, %39 : vector<16x1xf32>
    %c0_26 = arith.constant 0 : index
    %c0_27 = arith.constant 0 : index
    %41 = vector.load %arg10[%c0_26, %c0_27] : memref<16x1xf32, #tpu.memory_space<vmem>>, vector<16x1xf32>
    tpu.vector_store %arg10[%c0_26, %c0_27], %40 {strides = array<i32>} : memref<16x1xf32, #tpu.memory_space<vmem>>, vector<16x1xf32>,
    %c1_i32 = arith.constant 1 : i32
    %42 = arith.cmpi eq, %arg1, %c1_i32 : i32
    %43 = arith.extui %42 : i1 to i32
    %c0_i32_28 = arith.constant 0 : i32
    %44 = arith.cmpi ne, %43, %c0_i32_28 : i32
    scf.if %44 {
      %c0_29 = arith.constant 0 : index
      %c0_30 = arith.constant 0 : index
      %45 = vector.load %arg8[%c0_29, %c0_30] : memref<16x1xf32, #tpu.memory_space<vmem>>, vector<16x1xf32>
      %c0_31 = arith.constant 0 : index
      %c0_32 = arith.constant 0 : index
      %46 = vector.load %arg9[%c0_31, %c0_32] : memref<16x1xf32, #tpu.memory_space<vmem>>, vector<16x1xf32>
      %47 = math.log %46 : vector<16x1xf32>
      %48 = arith.addf %45, %47 : vector<16x1xf32>
      %c0_33 = arith.constant 0 : index
      %c0_34 = arith.constant 0 : index
      %49 = vector.load %arg10[%c0_33, %c0_34] : memref<16x1xf32, #tpu.memory_space<vmem>>, vector<16x1xf32>
      %50 = arith.subf %48, %49 : vector<16x1xf32>
      %c0_35 = arith.constant 0 : index
      %c0_36 = arith.constant 0 : index
      %51 = vector.load %arg7[%c0_35, %c0_36] : memref<16x1xf32, #tpu.memory_space<vmem>>, vector<16x1xf32>
      tpu.vector_store %arg7[%c0_35, %c0_36], %50 {strides = array<i32>} : memref<16x1xf32, #tpu.memory_space<vmem>>, vector<16x1xf32>,
    } else {
    }
    return
  }
  func.func @transform_0(%arg0: i32, %arg1: i32) -> (i32, i32) {
    %c0_i32 = arith.constant 0 : i32
    %c0_i32_0 = arith.constant 0 : i32
    return %arg0, %c0_i32 : i32, i32
  }
  func.func @transform_1(%arg0: i32, %arg1: i32) -> (i32, i32) {
    %c0_i32 = arith.constant 0 : i32
    %c0_i32_0 = arith.constant 0 : i32
    return %c0_i32, %arg1 : i32, i32
  }
  func.func @transform_2(%arg0: i32, %arg1: i32) -> (i32, i32) {
    %c0_i32 = arith.constant 0 : i32
    %c0_i32_0 = arith.constant 0 : i32
    return %c0_i32, %arg1 : i32, i32
  }
  func.func @transform_3(%arg0: i32, %arg1: i32) -> (i32, i32) {
    %c0_i32 = arith.constant 0 : i32
    %c0_i32_0 = arith.constant 0 : i32
    return %arg0, %c0_i32 : i32, i32
  }
  func.func @transform_4(%arg0: i32, %arg1: i32) -> (i32, i32) {
    %c0_i32 = arith.constant 0 : i32
    return %arg0, %arg1 : i32, i32
  }
  func.func @transform_5(%arg0: i32, %arg1: i32) -> (i32, i32) {
    %c0_i32 = arith.constant 0 : i32
    %c0_i32_0 = arith.constant 0 : i32
    return %arg0, %c0_i32 : i32, i32
  }
}

</mosaic_0001>

<bundles_post_ra>
// kernel: tpu_custom_call.1
= control target key start
LH: loop header
LB: loop body
LE: loop exit
PB: predicated region body
PF: predicated region fallthrough
CT: control target
= control target key end

     0   :  { %11 = vsyncpa [#allocation6], 0  ;;  %s1192_s0 = inlined_call_operand.vmem [shape: bf16[16,32], index: 0, kind: input, shape index: {}]   ;;  %s1193_s1 = inlined_call_operand.hbm [shape: bf16[32,256], index: 1, kind: input, shape index: {}]   ;;  %s1194_s2 = inlined_call_operand.vmem [shape: f32[1,256], index: 2, kind: input, shape index: {}]   ;;  %s1195_s3 = inlined_call_operand.vmem [shape: s32[16,1], index: 3, kind: input, shape index: {}]   ;;  %s1196_s4 = inlined_call_operand.hbm [shape: bf16[16,256], index: 4, kind: output, shape index: {0}]   ;;  %s1197_s5 = inlined_call_operand.vmem [shape: f32[16,1], index: 5, kind: output, shape index: {1}]  }
   0x1   :  { %13 = vsyncpa [#allocation6 + $0x1], 0 }
   0x2   :  { %14 = vsyncpa [#allocation7], 0 }
   0x3   :  { %16 = vsyncpa [#allocation7 + $0x1], 0  ;;  %s980_s18 = smov 0   ;;  %s982_s19 = smov 0  }
   0x4   :  { %s984_s20 = smov 0   ;;  %s986_s21 = smov 0  }
   0x5   :  { %s988_s22 = smov 0   ;;  %s990_s23 = smov 0  }
   0x6 LB: > { %s688_s24 = sadd.s32 4294967295, %s935_s23   ;;  %s689_s25 = sadd.s32 4294967294, %s935_s23   ;;  %s935_s23 = sphi %s990_s23, %s22_s23   ;;  %s931_s22 = sphi %s988_s22, %s1211_s22   ;;  %s927_s21 = sphi %s986_s21, %s1210_s21   ;;  %s923_s20 = sphi %s984_s20, %s1209_s20   ;;  %s919_s19 = sphi %s982_s19, %s1208_s19   ;;  %s915_s18 = sphi %s980_s18, %s1207_s18  }
   0x7   : > { %s31_s26 = sadd.s32 1, %s931_s22  ;;  %s67_s27 = sadd.s32 1, %s923_s20 }
   0x8   : > { %p32_p0 = scmp.ge.s32.totalorder %s31_s26, 2  ;;  %p74_p1 = scmp.ne.s32.totalorder %s923_s20, %s919_s19 }
   0x9   : > { %p75_p2 = scmp.eq.s32.totalorder %s935_s23, 0  ;;  %p80_p3 = scmp.ne.s32.totalorder %s919_s19, %s915_s18 }
   0xa   : > { %s1213_s26 = smov (%p32_p0, %s31_s26), 0  ;;  %p81_p5 = scmp.eq.s32.totalorder %s688_s24, 0 }
   0xb   : > { %p1021_p4 = por %p75_p2, %p74_p1  ;;  %s64_s29 = ssub.s32 %s931_s22, %s1213_s26 }
   0xc   : > { %p158_p6 = scmp.eq.s32.totalorder %s688_s24, 1  ;;  %p65_p7 = scmp.eq.s32.totalorder %s64_s29, 0 }
   0xd   : > { %p1027_p8 = por %p81_p5, %p80_p3  ;;  %p164_p10 = scmp.eq.s32.totalorder %s689_s25, 1 }
   0xe   : > { %p1031_p9 = por %p158_p6, %p74_p1  ;;  %p745_p13 = scmp.lt.s32.totalorder %s935_s23, 2 }
   0xf   : > { %s1036_s7 = scalar_select %p65_p7, %s923_s20, %s67_s27  }
  0x10   : > { %s1201_s6 = scalar_select %p1031_p9, 1, 0 }
  0x11   : > { %p1038_p11 = por %p164_p10, %p80_p3  ;;  %s228_s9 = sand.u32 1, %s923_s20  }
  0x12   : > { %s694_s10 = sshll.u32 %s228_s9, 4  ;;  %s695_s11 = sshll.u32 %s931_s22, 6 }
  0x13   : > { %s1202_s8 = scalar_select %p1038_p11, 1, 0 }
  0x14   : > { %s1049_s14 = scalar_lea.hbm %s1193_s1, %s695_s11  ;;  %s232_s15 = scalar_lea.vmem [#allocation5], %s694_s10 }
  0x15   : > { %s238_s16 = sshll.u32 %s232_s15, 4  ;;  %p1055_p0 = pnand %p745_p13, %p1021_p4  ;;  %s1051_s16 = int_to_ptr.vmem [resolvable:$true] %s238_s16 }
  0x16   : > { %s1059_s24 = scalar_lea.sflag [#allocation6], %s228_s9  ;;  %s823_s25 = scalar_lea.hbm %s1049_s14, 256 }
  0x17   : > { %p824_p1 = scmp.ne.s32.totalorder %s1049_s14, %s823_s25  ;;  %p825_p2 = pneg %p1055_p0 }
  0x18   : > { %s828_s28 = scalar_lea.hbm %s1193_s1, 512  ;;  %p829_p4 = scmp.lt.u32.totalorder %s1049_s14, %s1193_s1 }
  0x19   : > { %p826_p3 = pnand %p825_p2, %p824_p1  ;;  %p830_p6 = scmp.lt.u32.totalorder %s828_s28, %s823_s25 }
  0x1a   : > { %p832_p10 = scmp.lt.u32.totalorder %s823_s25, %s1049_s14 }
  0x1b   : > { %p827_p5 = pneg %p826_p3  ;;  %p831_p7 = por %p830_p6, %p829_p4 }
  0x1d   : > { %p833_p13 = por %p832_p10, %p831_p7 }
  0x1f   : > { %p834_p12 = pnand %p833_p13, %p827_p5 }
  0x21   : > { %837 = shalt.err (!%p834_p12)
}
  0x22   : > { %s838_s9 = scalar_lea.vmem %s1051_s16, 256  ;;  %s937_s12 = smov [#allocation5]  }
  0x23   : > { %p839_p1 = scmp.ne.s32.totalorder %s1051_s16, %s838_s9  ;;  %s843_s13 = sshll.u32 %s937_s12, 4  ;;  %s844_s13 = int_to_ptr.vmem [resolvable:$false] %s843_s13 }
  0x24   : > { %s845_s15 = scalar_lea.vmem %s844_s13, 512  ;;  %p846_p9 = scmp.lt.s32.totalorder %s1051_s16, %s844_s13 }
  0x25   : > { %p841_p3 = pnand %p839_p1, %p825_p2  ;;  %p847_p4 = scmp.lt.s32.totalorder %s845_s15, %s838_s9 }
  0x27   : > { %p842_p11 = pneg %p841_p3  ;;  %p848_p6 = por %p847_p4, %p846_p9 }
  0x29   : > { %p849_p7 = pnand %p848_p6, %p842_p11 }
  0x2b   : > { %852 = shalt.err (!%p849_p7)
}
  0x2c   : > { %s938_s25 = smov 128   ;;  %s939_s27 = smov 64  }
  0x2d   : > { %s940_s29 = smov 4   ;;  %p696_p12 = scmp.ge.s32.totalorder %s935_s23, 1 }
  0x2e   : > { %740 = dma.hbm_to_vmem [thread:$0]  (!%p1055_p0), %s1049_s14, 256, %s1051_s16, %s1059_s24, %s938_s25, %s939_s27, %s940_s29  }
  0x2f   : > { %p252_p2 = scmp.lt.s32.totalorder %s935_s23, 3 }
  0x31   : > { %p253_p5 = pnand %p696_p12, %p252_p2 }
  0x32   : > { %s1090_s28 = sand.u32 (!%p253_p5), 1, %s919_s19  }
  0x33   : > { %256 = sbr.rel (%p253_p5) target bundleno = 780 (0x30c), region = 36  ;;  %s697_s10 = sshll.u32 (!%p253_p5), %s1090_s28, 4 }
  0x34   : > { %s259_s11 = scalar_lea.sflag (!%p253_p5), [#allocation6], %s1090_s28  ;;  %s262_s9 = scalar_lea.vmem (!%p253_p5), [#allocation5], %s697_s10 }
  0x3a   : > { %906 = dma.done.wait (%p1027_p8), %s259_s11, 256  }
  0x3b   : > { %908 = vsyncadd (%p1027_p8), %s259_s11, 4294967040  ;;  %s698_s14 = sshll.u32 %s1090_s28, 3  ;;  %p313_p9 = scmp.lt.s32.totalorder %s927_s21, 1 }
  0x3c   : > { %s1107_s13 = scalar_lea.vmem [#allocation8], %s698_s14  ;;  %p699_p11 = scmp.ne.s32.totalorder %s927_s21, 0 }
  0x3d   : > { %s1101_s16 = scalar_select %p313_p9, %s927_s21, 1 }
  0x3e   : > { %333 = sbr.rel (%p699_p11) target bundleno = 69 (0x45), region = 44  ;;  %vm334_vm0 = vcmask (!%p699_p11), 7168   ;;  %v941_v0 = vmov (!%p699_p11), -inf   ;;  %v942_v1 = vmov (!%p699_p11), 0.0  }
  0x3f   : > { %s315_s12 = scalar_lea.vmem %s1194_s2, %s1101_s16  ;;  %335 = vst.msk [vmem:[#allocation2] sm:$0xff] (!%p699_p11), %vm334_vm0, %v941_v0  ;;  %336 = vst.msk [vmem:[#allocation2 + $0x8] sm:$0xff] (!%p699_p11), %vm334_vm0, %v941_v0 }
  0x40   : > { %337 = vst.msk [vmem:[#allocation3] sm:$0xff] (!%p699_p11), %vm334_vm0, %v942_v1  ;;  %338 = vst.msk [vmem:[#allocation3 + $0x8] sm:$0xff] (!%p699_p11), %vm334_vm0, %v942_v1 }
  0x41   : > { %339 = vst.msk [vmem:[#allocation4] sm:$0xff] (!%p699_p11), %vm334_vm0, %v942_v1  ;;  %340 = vst.msk [vmem:[#allocation4 + $0x8] sm:$0xff] (!%p699_p11), %vm334_vm0, %v942_v1 }
  0x45 PF: > { %v808_v2 = vld [vmem:[%s262_s9] sm:$0xff]   ;;  %v943_v3 = vmov 0.0   ;;  %v809_v4 = vld [vmem:[%s262_s9 + $0x8] sm:$0xff]   ;;  %vm944_vm1 = vmmov 0   ;;  %vm371_vm2 = vcmask 261120   ;;  %v945_v6 = vmov 0  }
  0x46   : > { %725 = vmatprep.subr.bf16.mxu0 %v943_v3  ;;  %729 = vmatprep.mubr.msk.bf16.mxu0 %vm944_vm1, %v943_v3  ;;  %v810_v5 = vld [vmem:[%s1192_s0] sm:$0xff]   ;;  %s707_s25 = sshll.u32 %s927_s21, 7  ;;  %vm466_vm3 = vcmask 7168   ;;  %v431_v21 = vld [vmem:[#allocation2 + $0x8] sm:$0xff]  ;;  %v477_v26 = vlaneseq  ;;  %p708_p8 = scmp.ne.s32.totalorder %s927_s21, 1 }
  0x47   : > { %726 = vmatpush3.bf16.msra.mxu0 %v808_v2  ;;  %807 = vset.pattern.permute.xlu0 %v945_v6  ;;  %v700_v7 = vld [vmem:[%s315_s12] ss:$0 sm:$0xff]  ;;  %v474_v16 = vstv %s707_s25  ;;  %v472_v24 = vld [vmem:[%s1195_s3 + $0x8] sm:$0xff]  ;;  %v440_v48 = vld [vmem:[#allocation3] sm:$0xff] }
  0x48   : > { %727 = vmatprep.subr.bf16.mxu0 %v943_v3  ;;  %806 = vset.pattern.permute.xlu1 %v945_v6  ;;  %v471_v15 = vld [vmem:[%s1195_s3] sm:$0xff]  ;;  %v476_v28 = vsub.s32 %v472_v24, %v474_v16  ;;  %v478_v29 = vand.u32 127, %v477_v26  ;;  %v441_v52 = vld [vmem:[#allocation3 + $0x8] sm:$0xff]  ;;  %v480_v57 = vld [vmem:[#allocation4 + $0x8] sm:$0xff] }
  0x49   : > { %v475_v17 = vsub.s32 %v471_v15, %v474_v16  ;;  %v430_v18 = vld [vmem:[#allocation2] sm:$0xff] }
  0x4a   : > { %v479_v42 = vld [vmem:[#allocation4] sm:$0xff] }
  0x4b   : > { %728 = vmatpush3.bf16.msra.mxu0 %v809_v4 }
  0x4e   : > { %730 = vmatmul.mubr.msk.bf16.vlgmr.msra.gmra.mrb[0].mxu0 %vm371_vm2, %v810_v5 }
 0x121   : > { %v409_v8 = vpop.f32.mrb[0].mxu0 }
 0x122   : > { %v410_v9 = vadd.f32 %v700_v7, %v409_v8  ;;  %v731_v10 = vpop.f32.mrb[1].mxu0 }
 0x123   : > { %v412_v11 = vpop.f32.mrb[2].mxu0 }
 0x124   : > { %v413_v12 = vadd.f32 %v700_v7, %v412_v11  ;;  %426 = vmax.xlane.f32.xlu0 %v410_v9  ;;  %v732_v13 = vpop.f32.mrb[3].mxu0 }
 0x126   : > { %v720_v14 = vpack.c.bf16 %v413_v12, %v410_v9 }
 0x128   : > { %721 = vst [vmem:[%s1107_s13] sm:$0xff] %v720_v14   ;;  %428 = vmax.xlane.f32.xlu0 %v413_v12 }
 0x13e   : > { %482 = vperm.xlu0 %807, %v475_v17  }
 0x1b1   : > { %v427_v19 = vpop.xlane.xlu0 %426 }
 0x1b2   : > { %v432_v20 = vmax.f32 %v430_v18, %v427_v19 }
 0x1b4   : > { %v434_v22 = vsub.f32 %v430_v18, %v432_v20  ;;  %469 = vst.msk [vmem:[#allocation2] sm:$0xff] %vm466_vm3, %v432_v20  ;;  %446 = vperm.xlu1 %806, %v432_v20  }
 0x1b5   : > { %v429_v23 = vpop.xlane.xlu0 %428 }
 0x1b6   : > { %v433_v25 = vmax.f32 %v431_v21, %v429_v23  ;;  %v436_v45 = vmul.f32 1.442695, %v434_v22 }
 0x1b8   : > { %v435_v27 = vsub.f32 %v431_v21, %v433_v25  ;;  %470 = vst.msk [vmem:[#allocation2 + $0x8] sm:$0xff] %vm466_vm3, %v433_v25  ;;  %451 = vperm.xlu1 %806, %v433_v25  }
 0x1ba   : > { %v438_v46 = vmul.f32 1.442695, %v435_v27 }
 0x1bb   : > { %v503_v63 = vld [vmem:[#allocation2] sm:$0xff] (!%p708_p8) }
 0x1bc   : > { %485 = vperm.xlu1 %806, %v476_v28  }
 0x1bd   : > { %v483_v30 = vpop.permute.xlu0 %482 }
 0x1be   : > { %vm487_vm4 = vcmp.eq.s32.totalorder %v478_v29, %v483_v30 }
 0x1bf   : > { %v489_v31 = vsel %vm487_vm4, %v410_v9, 0.0  ;;  %v504_v2 = vld [vmem:[#allocation2 + $0x8] sm:$0xff] (!%p708_p8) }
 0x1c0   : > { %491 = vadd.xlane.f32.xlu0 %v489_v31 }
 0x233   : > { %v447_v32 = vpop.permute.xlu1 %446 }
 0x234   : > { %v454_v33 = vsub.f32 %v410_v9, %v447_v32 }
 0x236   : > { %v456_v34 = vmul.f32 1.442695, %v454_v33 }
 0x237   : > { %v452_v35 = vpop.permute.xlu1 %451 }
 0x238   : > { %811 = vpow2.f32 %v456_v34  ;;  %v455_v36 = vsub.f32 %v413_v12, %v452_v35 }
 0x23a   : > { %v458_v37 = vmul.f32 1.442695, %v455_v36 }
 0x23b   : > { %v486_v39 = vpop.permute.xlu1 %485 }
 0x23c   : > { %813 = vpow2.f32 %v458_v37  ;;  %vm488_vm5 = vcmp.eq.s32.totalorder %v478_v29, %v486_v39 }
 0x23d   : > { %v490_v41 = vsel %vm488_vm5, %v413_v12, 0.0  ;;  %815 = vpow2.f32 %v436_v45 }
 0x23e   : > { %817 = vpow2.f32 %v438_v46 }
 0x242   : > { %v812_v38 = vpop.eup %811 }
 0x243   : > { %460 = vadd.xlane.f32.xlu1 %v812_v38 }
 0x246   : > { %v814_v40 = vpop.eup %813 }
 0x247   : > { %462 = vadd.xlane.f32.xlu1 %v814_v40  ;;  %v816_v47 = vpop.eup %815 }
 0x248   : > { %v442_v49 = vmul.f32 %v816_v47, %v440_v48  ;;  %v818_v50 = vpop.eup %817 }
 0x249   : > { %v443_v54 = vmul.f32 %v818_v50, %v441_v52 }
 0x24b   : > { %493 = vadd.xlane.f32.xlu1 %v490_v41 }
 0x24d   : > { %v492_v43 = vpop.xlane.xlu0 %491 }
 0x24e   : > { %v495_v44 = vadd.f32 %v492_v43, %v479_v42 }
 0x250   : > { %497 = vst.msk [vmem:[#allocation4] sm:$0xff] %vm466_vm3, %v495_v44 }
 0x257   : > { %v513_v3 = vld [vmem:[#allocation4] sm:$0xff] (!%p708_p8) }
 0x2d0   : > { %v461_v51 = vpop.xlane.xlu1 %460 }
 0x2d1   : > { %v464_v53 = vadd.f32 %v461_v51, %v442_v49 }
 0x2d3   : > { %467 = vst.msk [vmem:[#allocation3] sm:$0xff] %vm466_vm3, %v464_v53 }
 0x2d4   : > { %v463_v55 = vpop.xlane.xlu1 %462 }
 0x2d5   : > { %v465_v56 = vadd.f32 %v463_v55, %v443_v54  ;;  %502 = sbr.rel (%p708_p8) target bundleno = 753 (0x2f1), region = 48 }
 0x2d7   : > { %468 = vst.msk [vmem:[#allocation3 + $0x8] sm:$0xff] %vm466_vm3, %v465_v56 }
 0x2d8   : > { %v494_v58 = vpop.xlane.xlu1 %493 }
 0x2d9   : > { %v496_v59 = vadd.f32 %v494_v58, %v480_v57 }
 0x2da   : > { %v505_v60 = vld [vmem:[#allocation3] sm:$0xff] (!%p708_p8) }
 0x2db   : > { %498 = vst.msk [vmem:[#allocation4 + $0x8] sm:$0xff] %vm466_vm3, %v496_v59  ;;  %819 = vlog2.f32 (!%p708_p8), %v505_v60 }
 0x2de   : > { %v506_v61 = vld [vmem:[#allocation3 + $0x8] sm:$0xff] }
 0x2df   : > { %821 = vlog2.f32 %v506_v61 }
 0x2e2   : > { %v514_v6 = vld [vmem:[#allocation4 + $0x8] sm:$0xff] }
 0x2e5   : > { %v820_v62 = vpop.eup %819 }
 0x2e6   : > { %v508_v1 = vmul.f32 0.6931472, %v820_v62 }
 0x2e8   : > { %v511_v5 = vadd.f32 %v508_v1, %v503_v63 }
 0x2e9   : > { %v822_v0 = vpop.eup %821 }
 0x2ea   : > { %v510_v4 = vmul.f32 0.6931472, %v822_v0  ;;  %v515_v8 = vsub.f32 %v511_v5, %v513_v3 }
 0x2ec   : > { %v512_v7 = vadd.f32 %v510_v4, %v504_v2  ;;  %517 = vst.msk [vmem:[%s1197_s5] sm:$0xff] %vm466_vm3, %v515_v8 }
 0x2ee   : > { %v516_v9 = vsub.f32 %v512_v7, %v514_v6 }
 0x2f0   : > { %518 = vst.msk [vmem:[%s1197_s5 + $0x8] sm:$0xff] %vm466_vm3, %v516_v9 }
 0x2f1 PF: > { %s710_s24 = sshll.u32 %s927_s21, 6  ;;  %s540_s25 = sshll.u32 %s1107_s13, 4  ;;  %s1143_s25 = int_to_ptr.vmem [resolvable:$true] %s540_s25 }
 0x2f2   : > { %s1140_s15 = scalar_lea.hbm %s1196_s4, %s710_s24  ;;  %s520_s27 = scalar_lea.sflag [#allocation7], %s1090_s28 }
 0x2f3   : > { %s853_s29 = scalar_lea.vmem %s1143_s25, 128  ;;  %p1204_p10 = scmp.ne.s32.totalorder %s1201_s6, 0 }
 0x2f4   : > { %p854_p0 = scmp.ne.s32.totalorder %s1143_s25, %s853_s29  ;;  %s946_s10 = smov [#allocation8]  }
 0x2f5   : > { %s857_s11 = sshll.u32 %s946_s10, 4  ;;  %s858_s11 = int_to_ptr.vmem [resolvable:$false] %s857_s11 }
 0x2f6   : > { %p855_p13 = pnand %p854_p0, %p1204_p10  ;;  %s859_s21 = scalar_lea.vmem %s858_s11, 256 }
 0x2f7   : > { %p860_p3 = scmp.lt.s32.totalorder %s1143_s25, %s858_s11  ;;  %p861_p4 = scmp.lt.s32.totalorder %s859_s21, %s853_s29 }
 0x2f8   : > { %p856_p1 = pneg %p855_p13 }
 0x2f9   : > { %p862_p6 = por %p861_p4, %p860_p3 }
 0x2fb   : > { %p863_p7 = pnand %p862_p6, %p856_p1 }
 0x2fd   : > { %866 = shalt.err (!%p863_p7)
}
 0x2fe   : > { %s867_s13 = scalar_lea.hbm %s1140_s15, 128  ;;  %s871_s16 = scalar_lea.hbm %s1196_s4, 256 }
 0x2ff   : > { %p868_p12 = scmp.ne.s32.totalorder %s1140_s15, %s867_s13  ;;  %p872_p9 = scmp.lt.u32.totalorder %s1140_s15, %s1196_s4 }
 0x300   : > { %p873_p11 = scmp.lt.u32.totalorder %s871_s16, %s867_s13  ;;  %p875_p0 = scmp.lt.u32.totalorder %s867_s13, %s1140_s15 }
 0x301   : > { %p869_p2 = pnand %p868_p12, %p1204_p10 }
 0x302   : > { %p874_p8 = por %p873_p11, %p872_p9 }
 0x303   : > { %p870_p5 = pneg %p869_p2 }
 0x304   : > { %p876_p13 = por %p875_p0, %p874_p8 }
 0x306   : > { %p877_p1 = pnand %p876_p13, %p870_p5 }
 0x308   : > { %880 = shalt.err (!%p877_p1)
}
 0x309   : > { %s947_s12 = smov 64   ;;  %s948_s30 = smov 128  }
 0x30a   : > { %s949_s29 = smov 4  }
 0x30b   : > { %735 = dma.vmem_to_hbm [thread:$0]  (%p1204_p10), %s1143_s25, 128, %s1140_s15, %s520_s27, %s947_s12, %s948_s30, %s949_s29  }
 0x30c PF: > { %s567_s10 = sand.u32 1, %s915_s18   ;;  %p1205_p3 = scmp.ne.s32.totalorder %s1202_s8, 0 }
 0x30d   : > { %p1206_p4 = scmp.ge.s32.totalorder %s935_s23, 2  ;;  %s568_s11 = scalar_lea.sflag [#allocation7], %s567_s10 }
 0x30f   : > { %p742_p6 = pnand %p1206_p4, %p1205_p3 }
 0x311   : > { %910 = dma.done.wait (!%p742_p6), %s568_s11, 128  }
 0x312   : > { %912 = vsyncadd (!%p742_p6), %s568_s11, 4294967168  ;;  %s22_s23 = sadd.s32 1, %s935_s23   ;;  %s1207_s18 = smov %s919_s19 }
 0x313   : > { %p19_p7 = scmp.ge.s32.totalorder %s22_s23, 4   ;;  %s1208_s19 = smov %s923_s20 }
 0x314   : > { %s1209_s20 = smov %s1036_s7  ;;  %s1210_s21 = smov %s931_s22 }
 0x315   : > { %s1211_s22 = smov %s1213_s26  ;;  %21 = sbr.rel (!%p19_p7) target bundleno = 6 (0x6), region = 110 }
 0x31c   :  { %573 = vsyncpa [#allocation6], 1 }
 0x31d   :  { %575 = vsyncpa [#allocation6 + $0x1], 1 }
 0x31e   :  { %576 = vsyncpa [#allocation7], 1 }
 0x31f   :  { %578 = vsyncpa [#allocation7 + $0x1], 1 }

</bundles_post_ra>
